<compile_context>
chip_gen: v7x
topology: tpu7x:2x2x1
jax: 0.10.0
libtpu: 0.0.40
codegen_flags: <defaults>
</compile_context>

<pallas_src>
import functools

import jax
import jax.numpy as jnp
from jax import lax
from jax.experimental import pallas as pl
from jax.experimental.pallas import tpu as pltpu

TEMPERATURE = 0.01


def _custom_clip_kernel(feat_ref, w_ref, b_ref, text_ref, out_ref, *, inv_t):
    # adapter: features @ W + b (bf16 operands, f32 accumulation on the MXU)
    img = jnp.dot(feat_ref[...], w_ref[...], preferred_element_type=jnp.float32)
    img = img + b_ref[...]            # (1, D_out) broadcasts over the batch tile

    # 1 / ||image_row||  computed in f32 (EUP rsqrt); fold the 1/T scale here
    # (keeps the 100x magnitude out of the bf16 operands).
    inv_norm = lax.rsqrt(jnp.sum(img * img, axis=-1, keepdims=True)) * inv_t

    # logits_raw = img_unnorm @ text_normalized  (bf16 x bf16 -> f32 on MXU);
    # row scaling commutes with the matmul, so apply (inv_norm / T) afterwards.
    logits = jnp.dot(img.astype(jnp.bfloat16), text_ref[...],
                     preferred_element_type=jnp.float32)
    out_ref[...] = logits * inv_norm


def custom_clip_forward(features, adapter_w_t, adapter_b, text_features,
                        *, temperature=TEMPERATURE, block_b=256):
    """features: [B, D_in], adapter_w_t: [D_in, D_out], adapter_b: [1, D_out],
    text_features: [D_out, C].  Returns logits [B, C] (float32)."""
    B, D_in = features.shape
    D_out, C = text_features.shape

    # --- hoisted constant work: normalize text along dim 0 in f32, then cast
    #     to bf16 for the MXU.  Do NOT fold 1/T into the bf16 tensor. ---
    txt = text_features.astype(jnp.float32)
    txt = txt / jnp.linalg.norm(txt, axis=0, keepdims=True)
    txt = txt.astype(jnp.bfloat16)

    # --- alignment padding (zero padding is exact for this computation) ---
    C_pad = pl.cdiv(C, 128) * 128          # lane-dense output stores
    D_in_pad = pl.cdiv(D_in, 128) * 128    # full MXU passes on matmul 1
    D_out_pad = pl.cdiv(D_out, 128) * 128  # full MXU passes on matmul 2
    txt = jnp.pad(txt, ((0, D_out_pad - D_out), (0, C_pad - C)))

    w = adapter_w_t.astype(jnp.bfloat16)
    w = jnp.pad(w, ((0, D_in_pad - D_in), (0, D_out_pad - D_out)))
    b = jnp.pad(adapter_b.astype(jnp.float32).reshape(1, D_out),
                ((0, 0), (0, D_out_pad - D_out)))

    # --- balanced batch tiles (multiple of 16: bf16 (16,128) packing) ---
    num_blocks = pl.cdiv(B, block_b)
    if B >= 32:
        num_blocks = max(num_blocks, 2)    # keep both v7x TensorCores busy
    TB = pl.cdiv(pl.cdiv(B, num_blocks), 16) * 16
    B_pad = pl.cdiv(B, TB) * TB

    feats = features.astype(jnp.bfloat16)
    feats = jnp.pad(feats, ((0, B_pad - B), (0, D_in_pad - D_in)))

    grid = (B_pad // TB,)
    out = pl.pallas_call(
        functools.partial(_custom_clip_kernel, inv_t=float(1.0 / temperature)),
        out_shape=jax.ShapeDtypeStruct((B_pad, C_pad), jnp.float32),
        grid_spec=pltpu.PrefetchScalarGridSpec(
            num_scalar_prefetch=0,
            grid=grid,
            in_specs=[
                # batch tile marches with the grid (double-buffered stream)
                pl.BlockSpec((TB, D_in_pad), lambda i: (i, 0)),
                # grid-invariant operands: VMEM-resident, single-buffered
                pl.BlockSpec((D_in_pad, D_out_pad), lambda i: (0, 0),
                             pipeline_mode=pl.Buffered(1)),
                pl.BlockSpec((1, D_out_pad), lambda i: (0, 0),
                             pipeline_mode=pl.Buffered(1)),
                pl.BlockSpec((D_out_pad, C_pad), lambda i: (0, 0),
                             pipeline_mode=pl.Buffered(1)),
            ],
            out_specs=pl.BlockSpec((TB, C_pad), lambda i: (i, 0)),
        ),
        compiler_params=pltpu.CompilerParams(
            dimension_semantics=("parallel",),
        ),
    )(feats, w, b, txt)

    # drop batch padding and the zero-padded class columns
    return out[:B, :C]


def reference_forward(features, adapter_w_t, adapter_b, text_features,
                      temperature=TEMPERATURE):
    img = features @ adapter_w_t + adapter_b
    img = img / jnp.linalg.norm(img, axis=-1, keepdims=True)
    txt = text_features / jnp.linalg.norm(text_features, axis=0, keepdims=True)
    return (img @ txt) / temperature


if __name__ == "__main__":
    # Small, TPU-friendly shapes consistent with the forward pass.
    B = 8        # batch
    D_IN = 32    # adapter input feature dim
    D_OUT = 32   # adapter output dim == CLIP embedding dim
    C = 4        # number of classes (text prompts)

    key = jax.random.PRNGKey(0)
    k_feat, k_w, k_b, k_txt = jax.random.split(key, 4)

    features = jax.random.normal(k_feat, (B, D_IN), dtype=jnp.float32)
    # adapter == nn.Linear(D_IN, D_OUT); weight stored pre-transposed [D_in, D_out]
    adapter_w_t = jax.random.normal(k_w, (D_IN, D_OUT), dtype=jnp.float32) * 0.05
    adapter_b = jax.random.normal(k_b, (1, D_OUT), dtype=jnp.float32) * 0.01
    # text_features: torch.stack(per-class [D] vectors, dim=1) -> [D_OUT, C]
    text_features = jax.random.normal(k_txt, (D_OUT, C), dtype=jnp.float32)

    logits = custom_clip_forward(features, adapter_w_t, adapter_b, text_features)
    jax.block_until_ready(logits)

    ref = reference_forward(features, adapter_w_t, adapter_b, text_features)
    assert logits.shape == (B, C)
    # bf16 operands on both matmuls (f32 accumulation) shift logits (magnitude
    # ~O(10), scaled by 1/T=100) by roughly 1e-2 relative vs. the f32 reference.
    assert jnp.allclose(logits, ref, atol=5e-1, rtol=5e-2), "mismatch vs reference"

    # TODO(synk): get_text_embedding reads a JSON checkpoint on disk (and the
    # use_group branch reloads it at forward time); text embeddings are
    # synthesized in-script instead (no file I/O).
    print("KERNEL_OK")
</pallas_src>

<mosaic_0001>
module attributes {stable_mosaic.version = 11 : i64} {
  func.func @_custom_clip_kernel(%arg0: i32, %arg1: memref<16x128xbf16, #tpu.memory_space<vmem>>, %arg2: memref<128x128xbf16, #tpu.memory_space<vmem>>, %arg3: memref<1x128xf32, #tpu.memory_space<vmem>>, %arg4: memref<128x128xbf16, #tpu.memory_space<vmem>>, %arg5: memref<16x128xf32, #tpu.memory_space<vmem>>) attributes {dimension_semantics = [#tpu.dimension_semantics<parallel>], iteration_bounds = array<i64: 1>, scalar_prefetch = 0 : i64, scratch_operands = 0 : i64, tpu.core_type = #tpu.core_type<tc>, window_params = [{transform_indices = @transform_0, window_bounds = array<i64: 16, 128>}, {pipeline_mode = #tpu.pipeline_mode<synchronous>, transform_indices = @transform_1, window_bounds = array<i64: 128, 128>}, {pipeline_mode = #tpu.pipeline_mode<synchronous>, transform_indices = @transform_2, window_bounds = array<i64: 1, 128>}, {pipeline_mode = #tpu.pipeline_mode<synchronous>, transform_indices = @transform_3, window_bounds = array<i64: 128, 128>}, {transform_indices = @transform_4, window_bounds = array<i64: 16, 128>}]} {
    %c0 = arith.constant 0 : index
    %c0_0 = arith.constant 0 : index
    %0 = vector.load %arg1[%c0, %c0_0] : memref<16x128xbf16, #tpu.memory_space<vmem>>, vector<16x128xbf16>
    %c0_1 = arith.constant 0 : index
    %c0_2 = arith.constant 0 : index
    %1 = vector.load %arg2[%c0_1, %c0_2] : memref<128x128xbf16, #tpu.memory_space<vmem>>, vector<128x128xbf16>
    %cst = arith.constant dense<0.000000e+00> : vector<16x128xf32>
    %2 = tpu.matmul %0, %1, %cst {dimension_numbers = #tpu.dot_dimension_numbers<[1], [0], [0], [1], [0, 0, 1, 1], [], []>} : vector<16x128xbf16>, vector<128x128xbf16>, vector<16x128xf32> -> vector<16x128xf32>
    %c0_3 = arith.constant 0 : index
    %c0_4 = arith.constant 0 : index
    %3 = vector.load %arg3[%c0_3, %c0_4] : memref<1x128xf32, #tpu.memory_space<vmem>>, vector<1x128xf32>
    %4 = vector.broadcast %3 : vector<1x128xf32> to vector<16x128xf32>
    %5 = arith.addf %2, %4 : vector<16x128xf32>
    %6 = arith.mulf %5, %5 : vector<16x128xf32>
    %cst_5 = arith.constant dense<0.000000e+00> : vector<16xf32>
    %7 = vector.multi_reduction <add>, %6, %cst_5 [1] : vector<16x128xf32> to vector<16xf32>
    %8 = vector.shape_cast %7 : vector<16xf32> to vector<16x1xf32>
    %9 = math.rsqrt %8 : vector<16x1xf32>
    %cst_6 = arith.constant 1.000000e+02 : f32
    %10 = vector.broadcast %cst_6 : f32 to vector<16x1xf32>
    %11 = arith.mulf %9, %10 : vector<16x1xf32>
    %12 = arith.truncf %5 : vector<16x128xf32> to vector<16x128xbf16>
    %c0_7 = arith.constant 0 : index
    %c0_8 = arith.constant 0 : index
    %13 = vector.load %arg4[%c0_7, %c0_8] : memref<128x128xbf16, #tpu.memory_space<vmem>>, vector<128x128xbf16>
    %cst_9 = arith.constant dense<0.000000e+00> : vector<16x128xf32>
    %14 = tpu.matmul %12, %13, %cst_9 {dimension_numbers = #tpu.dot_dimension_numbers<[1], [0], [0], [1], [0, 0, 1, 1], [], []>} : vector<16x128xbf16>, vector<128x128xbf16>, vector<16x128xf32> -> vector<16x128xf32>
    %15 = vector.broadcast %11 : vector<16x1xf32> to vector<16x128xf32>
    %16 = arith.mulf %14, %15 : vector<16x128xf32>
    %c0_10 = arith.constant 0 : index
    %c0_11 = arith.constant 0 : index
    %17 = vector.load %arg5[%c0_10, %c0_11] : memref<16x128xf32, #tpu.memory_space<vmem>>, vector<16x128xf32>
    tpu.vector_store %arg5[%c0_10, %c0_11], %16 {strides = array<i32>} : memref<16x128xf32, #tpu.memory_space<vmem>>, vector<16x128xf32>,
    return
  }
  func.func @transform_0(%arg0: i32) -> (i32, i32) {
    %c0_i32 = arith.constant 0 : i32
    %c0_i32_0 = arith.constant 0 : i32
    return %arg0, %c0_i32 : i32, i32
  }
  func.func @transform_1(%arg0: i32) -> (i32, i32) {
    %c0_i32 = arith.constant 0 : i32
    %c0_i32_0 = arith.constant 0 : i32
    %c0_i32_1 = arith.constant 0 : i32
    return %c0_i32, %c0_i32_0 : i32, i32
  }
  func.func @transform_2(%arg0: i32) -> (i32, i32) {
    %c0_i32 = arith.constant 0 : i32
    %c0_i32_0 = arith.constant 0 : i32
    %c0_i32_1 = arith.constant 0 : i32
    return %c0_i32, %c0_i32_0 : i32, i32
  }
  func.func @transform_3(%arg0: i32) -> (i32, i32) {
    %c0_i32 = arith.constant 0 : i32
    %c0_i32_0 = arith.constant 0 : i32
    %c0_i32_1 = arith.constant 0 : i32
    return %c0_i32, %c0_i32_0 : i32, i32
  }
  func.func @transform_4(%arg0: i32) -> (i32, i32) {
    %c0_i32 = arith.constant 0 : i32
    %c0_i32_0 = arith.constant 0 : i32
    return %arg0, %c0_i32 : i32, i32
  }
}

</mosaic_0001>

<bundles_post_ra>
// kernel: tpu_custom_call.1
= control target key start
LH: loop header
LB: loop body
LE: loop exit
PB: predicated region body
PF: predicated region fallthrough
CT: control target
= control target key end

     0   :  { %9 = vsyncpa [#allocation3], 0  ;;  %s621_s0 = inlined_call_operand.hbm [shape: bf16[16,128], index: 0, kind: input, shape index: {}]   ;;  %s622_s1 = inlined_call_operand.hbm [shape: bf16[128,128], index: 1, kind: input, shape index: {}]   ;;  %s623_s2 = inlined_call_operand.vmem [shape: f32[1,128], index: 2, kind: input, shape index: {}]   ;;  %s624_s3 = inlined_call_operand.hbm [shape: bf16[128,128], index: 3, kind: input, shape index: {}]   ;;  %s625_s4 = inlined_call_operand.hbm [shape: f32[16,128], index: 4, kind: output, shape index: {}]  }
   0x1   :  { %10 = vsyncpa [#allocation6], 0 }
   0x2   :  { %11 = vsyncpa [#allocation4], 0  ;;  %s519_s15 = smov [#allocation5]   ;;  %s520_s17 = smov [#allocation2]  }
   0x3   :  { %s29_s16 = sshll.u32 %s519_s15, 4  ;;  %s17_s18 = sshll.u32 %s520_s17, 4  ;;  %s30_s16 = int_to_ptr.vmem [resolvable:$true] %s29_s16  ;;  %s554_s18 = int_to_ptr.vmem [resolvable:$true] %s17_s18 }
   0x4   :  { %s425_s21 = scalar_lea.hbm %s622_s1, 1024 }
   0x5   :  { %p426_p0 = scmp.ne.s32.totalorder %s622_s1, %s425_s21  ;;  %p429_p1 = scmp.lt.u32.totalorder %s425_s21, %s622_s1 }
   0x7   :  { %p431_p2 = pnand %p429_p1, %p426_p0 }
   0x9   :  { %434 = shalt.err (!%p431_p2)
}
   0xa   :  { %s435_s26 = scalar_lea.vmem %s30_s16, 1024  ;;  %p440_p4 = scmp.lt.s32.totalorder %s30_s16, %s30_s16 }
   0xb   :  { %p436_p3 = scmp.ne.s32.totalorder %s30_s16, %s435_s26  ;;  %p441_p5 = scmp.lt.s32.totalorder %s435_s26, %s435_s26 }
   0xd   :  { %p442_p6 = por %p441_p5, %p440_p4 }
   0xf   :  { %p443_p7 = pnand %p442_p6, %p436_p3 }
  0x11   :  { %446 = shalt.err (!%p443_p7)
}
  0x12   :  { %s521_s27 = smov 64   ;;  %s522_s28 = smov 4  }
  0x13   :  { %35 = dma.hbm_to_vmem [thread:$0]  %s622_s1, 1024, %s30_s16, [#allocation6], %s521_s27, %s521_s27, %s522_s28  }
  0x14   :  { %s447_s7 = scalar_lea.hbm %s621_s0, 128 }
  0x15   :  { %p448_p8 = scmp.ne.s32.totalorder %s621_s0, %s447_s7  ;;  %p451_p9 = scmp.lt.u32.totalorder %s447_s7, %s621_s0 }
  0x17   :  { %p453_p10 = pnand %p451_p9, %p448_p8 }
  0x19   :  { %456 = shalt.err (!%p453_p10)
}
  0x1a   :  { %s457_s12 = scalar_lea.vmem %s554_s18, 128  ;;  %p462_p12 = scmp.lt.s32.totalorder %s554_s18, %s554_s18 }
  0x1b   :  { %p458_p11 = scmp.ne.s32.totalorder %s554_s18, %s457_s12  ;;  %p463_p13 = scmp.lt.s32.totalorder %s457_s12, %s457_s12 }
  0x1d   :  { %p464_p0 = por %p463_p13, %p462_p12 }
  0x1f   :  { %p465_p1 = pnand %p464_p0, %p458_p11 }
  0x21   :  { %468 = shalt.err (!%p465_p1)
}
  0x22   :  { %23 = dma.hbm_to_vmem [thread:$0]  %s621_s0, 128, %s554_s18, [#allocation3], %s521_s27, %s521_s27, %s522_s28  }
  0x23   :  { %s523_s14 = smov [#allocation7]   ;;  %s469_s19 = scalar_lea.hbm %s624_s3, 1024 }
  0x24   :  { %s43_s15 = sshll.u32 %s523_s14, 4  ;;  %p470_p2 = scmp.ne.s32.totalorder %s624_s3, %s469_s19  ;;  %s44_s15 = int_to_ptr.vmem [resolvable:$true] %s43_s15 }
  0x25   :  { %p473_p3 = scmp.lt.u32.totalorder %s469_s19, %s624_s3 }
  0x27   :  { %p475_p4 = pnand %p473_p3, %p470_p2 }
  0x29   :  { %478 = shalt.err (!%p475_p4)
}
  0x2a   :  { %s479_s24 = scalar_lea.vmem %s44_s15, 1024  ;;  %p484_p6 = scmp.lt.s32.totalorder %s44_s15, %s44_s15 }
  0x2b   :  { %p480_p5 = scmp.ne.s32.totalorder %s44_s15, %s479_s24  ;;  %p485_p7 = scmp.lt.s32.totalorder %s479_s24, %s479_s24 }
  0x2d   :  { %p486_p8 = por %p485_p7, %p484_p6 }
  0x2f   :  { %p487_p9 = pnand %p486_p8, %p480_p5 }
  0x31   :  { %490 = shalt.err (!%p487_p9)
}
  0x32   :  { %49 = dma.hbm_to_vmem [thread:$0]  %s624_s3, 1024, %s44_s15, [#allocation6], %s521_s27, %s521_s27, %s522_s28  }
  0x33   :  { %513 = dma.done.wait [#allocation3], 128  }
  0x34   :  { %514 = vsyncadd [#allocation3], 4294967168 }
  0x35   :  { %515 = dma.done.wait [#allocation6], 2048  }
  0x36   :  { %516 = vsyncadd [#allocation6], 4294965248  ;;  %v524_v0 = vmov 0.0   ;;  %vm525_vm0 = vmmov 0   ;;  %v404_v1 = vld [vmem:[#allocation5] sm:$0xff]   ;;  %v405_v2 = vld [vmem:[#allocation5 + $0x8] sm:$0xff]  }
  0x37   :  { %354 = vmatprep.subr.bf16.mxu0 %v524_v0  ;;  %370 = vmatprep.mubr.msk.bf16.mxu0 %vm525_vm0, %v524_v0  ;;  %v406_v3 = vld [vmem:[#allocation5 + $0x10] sm:$0xff]   ;;  %v413_v4 = vld [vmem:[#allocation7] sm:$0xff]   ;;  %v407_v5 = vld [vmem:[#allocation5 + $0x18] sm:$0xff]  }
  0x38   :  { %374 = vmatprep.subr.bf16.mxu1 %v524_v0  ;;  %390 = vmatprep.mubr.msk.bf16.mxu1 %vm525_vm0, %v524_v0  ;;  %v414_v6 = vld [vmem:[#allocation7 + $0x8] sm:$0xff]   ;;  %v408_v7 = vld [vmem:[#allocation5 + $0x20] sm:$0xff]   ;;  %v415_v8 = vld [vmem:[#allocation7 + $0x10] sm:$0xff]  }
  0x39   :  { %355 = vmatpush3.bf16.msra.mxu0 %v404_v1  ;;  %375 = vmatpush3.bf16.msra.mxu1 %v413_v4  ;;  %v409_v9 = vld [vmem:[#allocation5 + $0x28] sm:$0xff]   ;;  %v416_v10 = vld [vmem:[#allocation7 + $0x18] sm:$0xff]   ;;  %v410_v11 = vld [vmem:[#allocation5 + $0x30] sm:$0xff]  }
  0x3a   :  { %356 = vmatprep.subr.bf16.mxu0 %v524_v0  ;;  %376 = vmatprep.subr.bf16.mxu1 %v524_v0  ;;  %v417_v12 = vld [vmem:[#allocation7 + $0x20] sm:$0xff]   ;;  %v411_v13 = vld [vmem:[#allocation5 + $0x38] sm:$0xff]   ;;  %v418_v14 = vld [vmem:[#allocation7 + $0x28] sm:$0xff]  }
  0x3b   :  { %v412_v15 = vld [vmem:[#allocation2] sm:$0xff]   ;;  %v419_v16 = vld [vmem:[#allocation7 + $0x30] sm:$0xff]  }
  0x3c   :  { %v420_v17 = vld [vmem:[#allocation7 + $0x38] sm:$0xff]  }
  0x3d   :  { %357 = vmatpush3.bf16.msra.mxu0 %v405_v2  ;;  %377 = vmatpush3.bf16.msra.mxu1 %v414_v6  ;;  %v318_v18 = vld [vmem:[%s623_s2] ss:$0 sm:$0xff]  ;;  %s526_s2 = smov [#allocation8]  }
  0x3e   :  { %358 = vmatprep.subr.bf16.mxu0 %v524_v0  ;;  %378 = vmatprep.subr.bf16.mxu1 %v524_v0  ;;  %s305_s26 = sshll.u32 %s526_s2, 4  ;;  %s306_s26 = int_to_ptr.vmem [resolvable:$true] %s305_s26 }
  0x3f   :  { %s491_s27 = scalar_lea.vmem %s306_s26, 256  ;;  %p496_p11 = scmp.lt.s32.totalorder %s306_s26, %s306_s26 }
  0x40   :  { %p492_p10 = scmp.ne.s32.totalorder %s306_s26, %s491_s27  ;;  %p497_p12 = scmp.lt.s32.totalorder %s491_s27, %s491_s27 }
  0x41   :  { %359 = vmatpush3.bf16.msra.mxu0 %v406_v3  ;;  %379 = vmatpush3.bf16.msra.mxu1 %v415_v8 }
  0x42   :  { %360 = vmatprep.subr.bf16.mxu0 %v524_v0  ;;  %380 = vmatprep.subr.bf16.mxu1 %v524_v0  ;;  %p498_p13 = por %p497_p12, %p496_p11 }
  0x44   :  { %p499_p0 = pnand %p498_p13, %p492_p10 }
  0x45   :  { %361 = vmatpush3.bf16.msra.mxu0 %v407_v5  ;;  %381 = vmatpush3.bf16.msra.mxu1 %v416_v10 }
  0x46   :  { %362 = vmatprep.subr.bf16.mxu0 %v524_v0  ;;  %382 = vmatprep.subr.bf16.mxu1 %v524_v0 }
  0x49   :  { %363 = vmatpush3.bf16.msra.mxu0 %v408_v7  ;;  %383 = vmatpush3.bf16.msra.mxu1 %v417_v12 }
  0x4a   :  { %364 = vmatprep.subr.bf16.mxu0 %v524_v0  ;;  %384 = vmatprep.subr.bf16.mxu1 %v524_v0 }
  0x4d   :  { %365 = vmatpush3.bf16.msra.mxu0 %v409_v9  ;;  %385 = vmatpush3.bf16.msra.mxu1 %v418_v14 }
  0x4e   :  { %366 = vmatprep.subr.bf16.mxu0 %v524_v0  ;;  %386 = vmatprep.subr.bf16.mxu1 %v524_v0 }
  0x51   :  { %367 = vmatpush3.bf16.msra.mxu0 %v410_v11  ;;  %387 = vmatpush3.bf16.msra.mxu1 %v419_v16 }
  0x52   :  { %368 = vmatprep.subr.bf16.mxu0 %v524_v0  ;;  %388 = vmatprep.subr.bf16.mxu1 %v524_v0 }
  0x55   :  { %369 = vmatpush3.bf16.msra.mxu0 %v411_v13  ;;  %389 = vmatpush3.bf16.msra.mxu1 %v420_v17 }
  0x58   :  { %371 = vmatmul.mubr.bf16.vlgmr.msra.gmra.mrb[0].mxu0 %v412_v15 }
 0x12b   :  { %v173_v19 = vpop.f32.mrb[0].mxu0 }
 0x12c   :  { %v174_v20 = vadd.f32 %v318_v18, %v173_v19  ;;  %v372_v21 = vpop.f32.mrb[1].mxu0 }
 0x12d   :  { %v176_v22 = vpop.f32.mrb[2].mxu0 }
 0x12e   :  { %v177_v23 = vadd.f32 %v318_v18, %v176_v22  ;;  %v373_v24 = vpop.f32.mrb[3].mxu0  ;;  %v180_v25 = vmul.f32 %v174_v20, %v174_v20 }
 0x130   :  { %v190_v26 = vpack.c.bf16 %v177_v23, %v174_v20  ;;  %182 = vadd.xlane.f32.xlu0 %v180_v25  ;;  %v181_v27 = vmul.f32 %v177_v23, %v177_v23 }
 0x132   :  { %391 = vmatmul.mubr.bf16.vlgmr.msra.gmra.mrb[0].mxu1 %v190_v26 }
 0x134   :  { %184 = vadd.xlane.f32.xlu0 %v181_v27 }
 0x1bd   :  { %v183_v28 = vpop.xlane.xlu0 %182 }
 0x1be   :  { %421 = vrsqrt.f32 %v183_v28 }
 0x1c1   :  { %v185_v29 = vpop.xlane.xlu0 %184 }
 0x1c2   :  { %423 = vrsqrt.f32 %v185_v29 }
 0x1c8   :  { %v422_v30 = vpop.eup %421 }
 0x1c9   :  { %v188_v32 = vmul.f32 100.0, %v422_v30 }
 0x1cc   :  { %v424_v31 = vpop.eup %423 }
 0x1cd   :  { %v189_v36 = vmul.f32 100.0, %v424_v31 }
 0x205   :  { %v289_v33 = vpop.f32.mrb[0].mxu1 }
 0x206   :  { %v296_v34 = vmul.f32 %v289_v33, %v188_v32  ;;  %v392_v35 = vpop.f32.mrb[1].mxu1 }
 0x207   :  { %v292_v37 = vpop.f32.mrb[2].mxu1 }
 0x208   :  { %298 = vst [vmem:[#allocation8] sm:$0xff] %v296_v34  ;;  %v297_v38 = vmul.f32 %v292_v37, %v189_v36  ;;  %v393_v39 = vpop.f32.mrb[3].mxu1 }
 0x20a   :  { %299 = vst [vmem:[#allocation8 + $0x8] sm:$0xff] %v297_v38 }
 0x20b   :  { %502 = shalt.err (!%p499_p0)
}
 0x20c   :  { %s503_s30 = scalar_lea.hbm %s625_s4, 256 }
 0x20d   :  { %p504_p1 = scmp.ne.s32.totalorder %s625_s4, %s503_s30  ;;  %p507_p2 = scmp.lt.u32.totalorder %s503_s30, %s625_s4 }
 0x20f   :  { %p509_p3 = pnand %p507_p2, %p504_p1 }
 0x211   :  { %512 = shalt.err (!%p509_p3)
}
 0x212   :  { %s527_s9 = smov 128   ;;  %s528_s10 = smov 8  }
 0x213   :  { %311 = dma.vmem_to_hbm [thread:$0]  %s306_s26, 256, %s625_s4, [#allocation4], %s527_s9, %s527_s9, %s528_s10  }
 0x214   :  { %517 = dma.done.wait [#allocation4], 256  }
 0x215   :  { %518 = vsyncadd [#allocation4], 4294967040 }
 0x216   :  { %315 = vsyncpa [#allocation3], 1 }
 0x217   :  { %316 = vsyncpa [#allocation6], 1 }
 0x218   :  { %317 = vsyncpa [#allocation4], 1 }

</bundles_post_ra>
